<compile_context>
chip_gen: v7x
topology: tpu7x:2x2x1
jax: 0.10.0
libtpu: 0.0.40
codegen_flags: <defaults>
</compile_context>

<pallas_src>
import functools

import jax
import jax.numpy as jnp
from jax.experimental import pallas as pl
from jax.experimental.pallas import tpu as pltpu

NEG_SLOPE = 0.01      # nn.LeakyReLU() default
DROP_P = 0.25         # dorp_ratio default


def _round_up(x, m):
    return (x + m - 1) // m * m


def _linear_block_kernel(seed_ref, x_ref, w_ref, b_ref, o_ref, *acc,
                         n_padded, neg_slope, drop_p, training):
    # Hoist ALL grid-position / scalar reads to the top level of the kernel body
    # (calling pl.program_id inside a pl.when branch breaks the interpret fallback).
    i = pl.program_id(0)
    j = pl.program_id(1)
    k = pl.program_id(2)
    nk = pl.num_programs(2)
    if training:
        seed_u = seed_ref[0].astype(jnp.uint32)

    # f32 output -> accumulate directly into the resident output tile (no scratch).
    acc_ref = acc[0] if acc else o_ref

    @pl.when(k == 0)
    def _init():
        acc_ref[...] = jnp.zeros_like(acc_ref)

    # x tile: (tm, tk); w tile: (tk, tn) -> plain MXU matmul, f32 accumulate.
    acc_ref[...] += jnp.dot(x_ref[...], w_ref[...],
                            preferred_element_type=jnp.float32)

    @pl.when(k == nk - 1)
    def _epilogue():
        y = acc_ref[...].astype(jnp.float32) + b_ref[...].astype(jnp.float32)
        y = jnp.where(y > 0, y, neg_slope * y)           # LeakyReLU

        if training:
            tm, tn = y.shape
            iu = i.astype(jnp.uint32)
            ju = j.astype(jnp.uint32)
            rows = jax.lax.broadcasted_iota(jnp.int32, (tm, tn), 0).astype(jnp.uint32)
            cols = jax.lax.broadcasted_iota(jnp.int32, (tm, tn), 1).astype(jnp.uint32)
            # Global element id (mod 2^32).  Wraps for >4G-element outputs; acceptable
            # for dropout-mask purposes.
            base = iu * jnp.uint32((tm * n_padded) & 0xFFFFFFFF) + ju * jnp.uint32(tn)
            idx = base + rows * jnp.uint32(n_padded) + cols

            # 2-round integer hash (Weyl multiply + xor-shift mix).
            h = (idx + seed_u) * jnp.uint32(0x9E3779B9)
            h = h ^ (h >> 16)
            h = h * jnp.uint32(0x7FEB352D)
            h = h ^ (h >> 15)

            threshold = jnp.uint32(int(drop_p * (2 ** 32)) & 0xFFFFFFFF)
            keep = h >= threshold                        # P(keep) = 1 - p
            y = jnp.where(keep, y * (1.0 / (1.0 - drop_p)), 0.0)

        o_ref[...] = y.astype(o_ref.dtype)


def linear_block(x, weight, bias, *, seed=0, training=True, compute_dtype=None):
    """x: [M, K]; weight: [N, K] (PyTorch layout); bias: [N] -> out: [M, N].

    compute_dtype=jnp.bfloat16 streams/multiplies in bf16 (f32 accumulation) for
    large layers; default keeps the input dtype.
    """
    M, K = x.shape
    N, K2 = weight.shape
    assert K == K2 and bias.shape == (N,)

    out_dtype = x.dtype
    if compute_dtype is not None:
        x = x.astype(compute_dtype)
        weight = weight.astype(compute_dtype)
    in_itemsize = jnp.dtype(x.dtype).itemsize
    out_itemsize = jnp.dtype(out_dtype).itemsize
    sub = {4: 8, 2: 16, 1: 32}.get(in_itemsize, 8)       # dtype-aware sublane rounding

    # Tile sizes: lane dims multiples of 128, caps at 512 (MXU-bound intensity,
    # a few MiB of VMEM per buffer).
    tm = min(_round_up(M, sub), 512)
    tn = min(_round_up(N, 128), 512)
    tk = min(_round_up(K, 128), 512)

    # Megacore (v7x has 2 TCs): make sure the parallel axes expose >= 2 blocks
    # when the problem is large enough to split without excessive padding.
    if pl.cdiv(M, tm) * pl.cdiv(N, tn) < 2:
        if _round_up(N, 128) >= 256:
            tn = _round_up(pl.cdiv(_round_up(N, 128), 2), 128)
        elif _round_up(M, sub) >= 2 * sub:
            tm = _round_up(pl.cdiv(_round_up(M, sub), 2), sub)

    Mp, Np, Kp = _round_up(M, tm), _round_up(N, tn), _round_up(K, tk)

    x_p = x if (Mp == M and Kp == K) else jnp.pad(x, ((0, Mp - M), (0, Kp - K)))
    # One-time wrapper transpose to [K, N]: keeps the per-step MXU feed transpose-free.
    w_t = weight.T
    w_p = w_t if (Kp == K and Np == N) else jnp.pad(w_t, ((0, Kp - K), (0, Np - N)))
    b_p = (bias if Np == N else jnp.pad(bias, (0, Np - N))).reshape(1, Np)

    grid = (Mp // tm, Np // tn, Kp // tk)
    seed_arr = jnp.asarray([seed], dtype=jnp.int32)

    use_scratch = jnp.dtype(out_dtype) != jnp.dtype(jnp.float32)
    scratch_shapes = [pltpu.VMEM((tm, tn), jnp.float32)] if use_scratch else []

    kernel = functools.partial(
        _linear_block_kernel,
        n_padded=Np, neg_slope=NEG_SLOPE, drop_p=DROP_P, training=training)

    # Realistic traffic: x is re-streamed once per N-tile, w once per M-tile.
    cost = pl.CostEstimate(
        flops=2 * Mp * Np * Kp,
        transcendentals=0,
        bytes_accessed=int((x_p.size * (Np // tn) + w_p.size * (Mp // tm)) * in_itemsize
                           + Mp * Np * out_itemsize + Np * 4))

    # Explicit VMEM budget with headroom (v7x: 64 MiB physical).
    vmem_need = (2 * (tm * tk + tk * tn + tn) * in_itemsize
                 + 2 * tm * tn * out_itemsize
                 + (tm * tn * 4 if use_scratch else 0))
    vmem_limit = int(min(max(2 * vmem_need, 32 * 1024 * 1024), 48 * 1024 * 1024))

    out_p = pl.pallas_call(
        kernel,
        out_shape=jax.ShapeDtypeStruct((Mp, Np), out_dtype),
        grid_spec=pltpu.PrefetchScalarGridSpec(
            num_scalar_prefetch=1,          # seed lands in SMEM
            grid=grid,
            in_specs=[
                pl.BlockSpec((tm, tk), lambda i, j, k, seed: (i, k)),   # x
                pl.BlockSpec((tk, tn), lambda i, j, k, seed: (k, j)),   # weight [K, N]
                pl.BlockSpec((1, tn), lambda i, j, k, seed: (0, j)),    # bias
            ],
            out_specs=pl.BlockSpec((tm, tn), lambda i, j, k, seed: (i, j)),
            scratch_shapes=scratch_shapes,
        ),
        compiler_params=pltpu.CompilerParams(
            dimension_semantics=("parallel", "parallel", "arbitrary"),
            vmem_limit_bytes=vmem_limit,
        ),
        cost_estimate=cost,
    )(seed_arr, x_p, w_p, b_p)

    if Mp != M or Np != N:
        out_p = out_p[:M, :N]
    return out_p


if __name__ == "__main__":
    # Small shapes consistent with the module: batch=8, in_channel=32, out_channel=64.
    batch, in_channel, out_channel = 8, 32, 64

    key = jax.random.PRNGKey(0)
    kx, kw, kb = jax.random.split(key, 3)

    x = jax.random.normal(kx, (batch, in_channel), dtype=jnp.float32)
    # PyTorch-Linear-like uniform init with bound 1/sqrt(fan_in).
    bound = 1.0 / jnp.sqrt(jnp.float32(in_channel))
    weight = jax.random.uniform(kw, (out_channel, in_channel),
                                minval=-bound, maxval=bound, dtype=jnp.float32)
    bias = jax.random.uniform(kb, (out_channel,),
                              minval=-bound, maxval=bound, dtype=jnp.float32)

    out_train = linear_block(x, weight, bias, seed=0, training=True)
    jax.block_until_ready(out_train)

    out_eval = linear_block(x, weight, bias, training=False)
    jax.block_until_ready(out_eval)

    # Reference: linear + LeakyReLU (dropout identity in eval).
    y_ref = x @ weight.T + bias
    y_ref = jnp.where(y_ref > 0, y_ref, NEG_SLOPE * y_ref)
    assert jnp.allclose(out_eval, y_ref, atol=5e-3, rtol=5e-3), "eval-mode mismatch"

    # Training mode: every element must be either 0 (dropped) or y_ref/(1-p) (kept).
    scaled = y_ref / (1.0 - DROP_P)
    elem_ok = jnp.minimum(jnp.abs(out_train), jnp.abs(out_train - scaled)) < 1e-2
    assert bool(jnp.all(elem_ok)), "dropout output not in {0, y/(1-p)}"

    # Drop fraction should be roughly p (very loose bound; 512 elements).
    drop_frac = float(jnp.mean((out_train == 0.0).astype(jnp.float32)))
    assert 0.05 < drop_frac < 0.55, f"implausible drop fraction {drop_frac}"

    print("KERNEL_OK")
</pallas_src>

<mosaic_0001>
module attributes {stable_mosaic.version = 11 : i64} {
  func.func @_linear_block_kernel(%arg0: i32, %arg1: i32, %arg2: i32, %arg3: memref<1xi32, #tpu.memory_space<smem>>, %arg4: memref<8x128xf32, #tpu.memory_space<vmem>>, %arg5: memref<128x128xf32, #tpu.memory_space<vmem>>, %arg6: memref<1x128xf32, #tpu.memory_space<vmem>>, %arg7: memref<8x128xf32, #tpu.memory_space<vmem>>) attributes {dimension_semantics = [#tpu.dimension_semantics<parallel>, #tpu.dimension_semantics<parallel>, #tpu.dimension_semantics<arbitrary>], iteration_bounds = array<i64: 1, 1, 1>, scalar_prefetch = 1 : i64, scratch_operands = 0 : i64, tpu.core_type = #tpu.core_type<tc>, window_params = [{transform_indices = @transform_0, window_bounds = array<i64: 8, 128>}, {transform_indices = @transform_1, window_bounds = array<i64: 128, 128>}, {transform_indices = @transform_2, window_bounds = array<i64: 1, 128>}, {transform_indices = @transform_3, window_bounds = array<i64: 8, 128>}]} {
    %c0 = arith.constant 0 : index
    %0 = memref.load %arg3[%c0] : memref<1xi32, #tpu.memory_space<smem>>
    %c0_i32 = arith.constant 0 : i32
    %1 = arith.cmpi eq, %arg2, %c0_i32 : i32
    %2 = arith.extui %1 : i1 to i32
    %c0_i32_0 = arith.constant 0 : i32
    %3 = arith.cmpi ne, %2, %c0_i32_0 : i32
    scf.if %3 {
      %cst_11 = arith.constant 0.000000e+00 : f32
      %13 = vector.broadcast %cst_11 : f32 to vector<8x128xf32>
      %c0_12 = arith.constant 0 : index
      %c0_13 = arith.constant 0 : index
      %14 = vector.load %arg7[%c0_12, %c0_13] : memref<8x128xf32, #tpu.memory_space<vmem>>, vector<8x128xf32>
      tpu.vector_store %arg7[%c0_12, %c0_13], %13 {strides = array<i32>} : memref<8x128xf32, #tpu.memory_space<vmem>>, vector<8x128xf32>,
    } else {
    }
    %c0_1 = arith.constant 0 : index
    %c0_2 = arith.constant 0 : index
    %4 = vector.load %arg7[%c0_1, %c0_2] : memref<8x128xf32, #tpu.memory_space<vmem>>, vector<8x128xf32>
    %c0_3 = arith.constant 0 : index
    %c0_4 = arith.constant 0 : index
    %5 = vector.load %arg4[%c0_3, %c0_4] : memref<8x128xf32, #tpu.memory_space<vmem>>, vector<8x128xf32>
    %c0_5 = arith.constant 0 : index
    %c0_6 = arith.constant 0 : index
    %6 = vector.load %arg5[%c0_5, %c0_6] : memref<128x128xf32, #tpu.memory_space<vmem>>, vector<128x128xf32>
    %cst = arith.constant dense<0.000000e+00> : vector<8x128xf32>
    %7 = tpu.matmul %5, %6, %cst {dimension_numbers = #tpu.dot_dimension_numbers<[1], [0], [0], [1], [0, 0, 1, 1], [], []>} : vector<8x128xf32>, vector<128x128xf32>, vector<8x128xf32> -> vector<8x128xf32>
    %8 = arith.addf %4, %7 : vector<8x128xf32>
    %c0_7 = arith.constant 0 : index
    %c0_8 = arith.constant 0 : index
    %9 = vector.load %arg7[%c0_7, %c0_8] : memref<8x128xf32, #tpu.memory_space<vmem>>, vector<8x128xf32>
    tpu.vector_store %arg7[%c0_7, %c0_8], %8 {strides = array<i32>} : memref<8x128xf32, #tpu.memory_space<vmem>>, vector<8x128xf32>,
    %c0_i32_9 = arith.constant 0 : i32
    %10 = arith.cmpi eq, %arg2, %c0_i32_9 : i32
    %11 = arith.extui %10 : i1 to i32
    %c0_i32_10 = arith.constant 0 : i32
    %12 = arith.cmpi ne, %11, %c0_i32_10 : i32
    scf.if %12 {
      %c0_11 = arith.constant 0 : index
      %c0_12 = arith.constant 0 : index
      %13 = vector.load %arg7[%c0_11, %c0_12] : memref<8x128xf32, #tpu.memory_space<vmem>>, vector<8x128xf32>
      %c0_13 = arith.constant 0 : index
      %c0_14 = arith.constant 0 : index
      %14 = vector.load %arg6[%c0_13, %c0_14] : memref<1x128xf32, #tpu.memory_space<vmem>>, vector<1x128xf32>
      %15 = vector.broadcast %14 : vector<1x128xf32> to vector<8x128xf32>
      %16 = arith.addf %13, %15 : vector<8x128xf32>
      %cst_15 = arith.constant 0.000000e+00 : f32
      %17 = vector.broadcast %cst_15 : f32 to vector<8x128xf32>
      %18 = arith.cmpf ogt, %16, %17 : vector<8x128xf32>
      %cst_16 = arith.constant 0.00999999977 : f32
      %19 = vector.broadcast %cst_16 : f32 to vector<8x128xf32>
      %20 = arith.mulf %19, %16 : vector<8x128xf32>
      %21 = arith.select %18, %16, %20 : vector<8x128xi1>, vector<8x128xf32>
      %22 = tpu.iota {dimensions = array<i32: 0>} : vector<8x128xi32>
      %23 = tpu.iota {dimensions = array<i32: 1>} : vector<8x128xi32>
      %c1024_i32 = arith.constant 1024 : i32
      %24 = arith.muli %arg0, %c1024_i32 : i32
      %c128_i32 = arith.constant 128 : i32
      %25 = arith.muli %arg1, %c128_i32 : i32
      %26 = arith.addi %24, %25 : i32
      %c128_i32_17 = arith.constant 128 : i32
      %27 = vector.broadcast %c128_i32_17 : i32 to vector<8x128xi32>
      %28 = arith.muli %22, %27 : vector<8x128xi32>
      %29 = vector.broadcast %26 : i32 to vector<8x128xi32>
      %30 = arith.addi %29, %28 : vector<8x128xi32>
      %31 = arith.addi %30, %23 : vector<8x128xi32>
      %32 = vector.broadcast %0 : i32 to vector<8x128xi32>
      %33 = arith.addi %31, %32 : vector<8x128xi32>
      %c-1640531527_i32 = arith.constant -1640531527 : i32
      %34 = vector.broadcast %c-1640531527_i32 : i32 to vector<8x128xi32>
      %35 = arith.muli %33, %34 : vector<8x128xi32>
      %c16_i32 = arith.constant 16 : i32
      %36 = vector.broadcast %c16_i32 : i32 to vector<8x128xi32>
      %37 = arith.shrui %35, %36 : vector<8x128xi32>
      %38 = arith.xori %35, %37 : vector<8x128xi32>
      %c2146121005_i32 = arith.constant 2146121005 : i32
      %39 = vector.broadcast %c2146121005_i32 : i32 to vector<8x128xi32>
      %40 = arith.muli %38, %39 : vector<8x128xi32>
      %c15_i32 = arith.constant 15 : i32
      %41 = vector.broadcast %c15_i32 : i32 to vector<8x128xi32>
      %42 = arith.shrui %40, %41 : vector<8x128xi32>
      %43 = arith.xori %40, %42 : vector<8x128xi32>
      %c1073741824_i32 = arith.constant 1073741824 : i32
      %44 = vector.broadcast %c1073741824_i32 : i32 to vector<8x128xi32>
      %45 = arith.cmpi uge, %43, %44 : vector<8x128xi32>
      %cst_18 = arith.constant 1.33333337 : f32
      %46 = vector.broadcast %cst_18 : f32 to vector<8x128xf32>
      %47 = arith.mulf %21, %46 : vector<8x128xf32>
      %cst_19 = arith.constant 0.000000e+00 : f32
      %48 = vector.broadcast %cst_19 : f32 to vector<8x128xf32>
      %49 = arith.select %45, %47, %48 : vector<8x128xi1>, vector<8x128xf32>
      %c0_20 = arith.constant 0 : index
      %c0_21 = arith.constant 0 : index
      %50 = vector.load %arg7[%c0_20, %c0_21] : memref<8x128xf32, #tpu.memory_space<vmem>>, vector<8x128xf32>
      tpu.vector_store %arg7[%c0_20, %c0_21], %49 {strides = array<i32>} : memref<8x128xf32, #tpu.memory_space<vmem>>, vector<8x128xf32>,
    } else {
    }
    return
  }
  func.func @transform_0(%arg0: i32, %arg1: i32, %arg2: i32, %arg3: memref<1xi32, #tpu.memory_space<smem>>) -> (i32, i32) {
    %c0_i32 = arith.constant 0 : i32
    return %arg0, %arg2 : i32, i32
  }
  func.func @transform_1(%arg0: i32, %arg1: i32, %arg2: i32, %arg3: memref<1xi32, #tpu.memory_space<smem>>) -> (i32, i32) {
    %c0_i32 = arith.constant 0 : i32
    return %arg2, %arg1 : i32, i32
  }
  func.func @transform_2(%arg0: i32, %arg1: i32, %arg2: i32, %arg3: memref<1xi32, #tpu.memory_space<smem>>) -> (i32, i32) {
    %c0_i32 = arith.constant 0 : i32
    %c0_i32_0 = arith.constant 0 : i32
    return %c0_i32, %arg1 : i32, i32
  }
  func.func @transform_3(%arg0: i32, %arg1: i32, %arg2: i32, %arg3: memref<1xi32, #tpu.memory_space<smem>>) -> (i32, i32) {
    %c0_i32 = arith.constant 0 : i32
    return %arg0, %arg1 : i32, i32
  }
}

</mosaic_0001>

<bundles_post_ra>
// kernel: tpu_custom_call.1
= control target key start
LH: loop header
LB: loop body
LE: loop exit
PB: predicated region body
PF: predicated region fallthrough
CT: control target
= control target key end

     0   :  { %10 = vsyncpa [#allocation5], 0  ;;  %s432_s0 = inlined_call_operand.<no memory space> [shape: s32[1], index: 0, kind: input, shape index: {}]   ;;  %s433_s1 = inlined_call_operand.hbm [shape: f32[8,128], index: 1, kind: input, shape index: {}]   ;;  %s434_s2 = inlined_call_operand.hbm [shape: f32[128,128], index: 2, kind: input, shape index: {}]   ;;  %s435_s3 = inlined_call_operand.vmem [shape: f32[1,128], index: 3, kind: input, shape index: {}]   ;;  %s436_s4 = inlined_call_operand.hbm [shape: f32[8,128], index: 4, kind: output, shape index: {}]  }
   0x1   :  { %11 = vsyncpa [#allocation8], 0 }
   0x2   :  { %12 = vsyncpa [#allocation6], 0  ;;  %s350_s15 = smov [#allocation4]   ;;  %s351_s17 = smov [#allocation7]  }
   0x3   :  { %s19_s16 = sshll.u32 %s350_s15, 4  ;;  %s28_s18 = sshll.u32 %s351_s17, 4  ;;  %s20_s16 = int_to_ptr.vmem [resolvable:$true] %s19_s16  ;;  %s383_s18 = int_to_ptr.vmem [resolvable:$true] %s28_s18 }
   0x4   :  { %s278_s21 = scalar_lea.hbm %s433_s1, 128 }
   0x5   :  { %p279_p0 = scmp.ne.s32.totalorder %s433_s1, %s278_s21  ;;  %p282_p1 = scmp.lt.u32.totalorder %s278_s21, %s433_s1 }
   0x7   :  { %p284_p2 = pnand %p282_p1, %p279_p0 }
   0x9   :  { %287 = shalt.err (!%p284_p2)
}
   0xa   :  { %s288_s26 = scalar_lea.vmem %s20_s16, 128  ;;  %p293_p4 = scmp.lt.s32.totalorder %s20_s16, %s20_s16 }
   0xb   :  { %p289_p3 = scmp.ne.s32.totalorder %s20_s16, %s288_s26  ;;  %p294_p5 = scmp.lt.s32.totalorder %s288_s26, %s288_s26 }
   0xd   :  { %p295_p6 = por %p294_p5, %p293_p4 }
   0xf   :  { %p296_p7 = pnand %p295_p6, %p289_p3 }
  0x11   :  { %299 = shalt.err (!%p296_p7)
}
  0x12   :  { %22 = dma.hbm_to_vmem [thread:$0]  %s433_s1, 128, %s20_s16, [#allocation5]  }
  0x13   :  { %s300_s5 = scalar_lea.hbm %s434_s2, 2048 }
  0x14   :  { %p301_p8 = scmp.ne.s32.totalorder %s434_s2, %s300_s5  ;;  %p304_p9 = scmp.lt.u32.totalorder %s300_s5, %s434_s2 }
  0x16   :  { %p306_p10 = pnand %p304_p9, %p301_p8 }
  0x18   :  { %309 = shalt.err (!%p306_p10)
}
  0x19   :  { %s310_s10 = scalar_lea.vmem %s383_s18, 2048  ;;  %p315_p12 = scmp.lt.s32.totalorder %s383_s18, %s383_s18 }
  0x1a   :  { %p311_p11 = scmp.ne.s32.totalorder %s383_s18, %s310_s10  ;;  %p316_p13 = scmp.lt.s32.totalorder %s310_s10, %s310_s10 }
  0x1c   :  { %p317_p0 = por %p316_p13, %p315_p12 }
  0x1e   :  { %p318_p1 = pnand %p317_p0, %p311_p11 }
  0x20   :  { %321 = shalt.err (!%p318_p1)
}
  0x21   :  { %s352_s1 = smov 128   ;;  %s353_s11 = smov 8  }
  0x22   :  { %34 = dma.hbm_to_vmem [thread:$0]  %s434_s2, 2048, %s383_s18, [#allocation8], %s352_s1, %s352_s1, %s353_s11  }
  0x23   :  { %344 = dma.done.wait [#allocation5], 128  }
  0x24   :  { %345 = vsyncadd [#allocation5], 4294967168 }
  0x25   :  { %346 = dma.done.wait [#allocation8], 2048  }
  0x26   :  { %347 = vsyncadd [#allocation8], 4294965248  ;;  %v354_v0 = vmov 0.0|0.0   ;;  %vm355_vm0 = vmmov 0   ;;  %v356_v1 = vmov 0.0   ;;  %v51_v2 = vld [vmem:[#allocation7] sm:$0xff]  ;;  %v154_v27 = vlaneseq }
  0x27   :  { %246 = vmatprep.subr.bf16.mxu0 %v354_v0  ;;  %243 = vmatprep.mubr.msk.f32.mxu0 %vm355_vm0, %v356_v1  ;;  %v52_v3 = vld [vmem:[#allocation7 + $0x8] sm:$0xff]  ;;  %v53_v4 = vld [vmem:[#allocation7 + $0x10] sm:$0xff]  ;;  %v54_v6 = vld [vmem:[#allocation7 + $0x18] sm:$0xff]  ;;  %v165_v32 = vstv %s432_s0  ;;  %s357_s17 = smov [#allocation9]  }
  0x28   :  { %v247_v5 = vpack.c.bf16 %v52_v3, %v51_v2  ;;  %v250_v7 = vpack.c.bf16 %v54_v6, %v53_v4  ;;  %v55_v8 = vld [vmem:[#allocation7 + $0x20] sm:$0xff]  ;;  %v56_v9 = vld [vmem:[#allocation7 + $0x28] sm:$0xff]  ;;  %v57_v11 = vld [vmem:[#allocation7 + $0x30] sm:$0xff]  ;;  %v155_v28 = vshrl.u32 %v154_v27, 7  ;;  %v157_v29 = vand.u32 127, %v154_v27  ;;  %s183_s18 = sshll.u32 %s357_s17, 4  ;;  %s184_s18 = int_to_ptr.vmem [resolvable:$true] %s183_s18 }
  0x29   :  { %v253_v10 = vpack.c.bf16 %v56_v9, %v55_v8  ;;  %v58_v12 = vld [vmem:[#allocation7 + $0x38] sm:$0xff]  ;;  %v59_v14 = vld [vmem:[#allocation7 + $0x40] sm:$0xff]  ;;  %v60_v15 = vld [vmem:[#allocation7 + $0x48] sm:$0xff]  ;;  %s322_s0 = scalar_lea.vmem %s184_s18, 128  ;;  %p327_p3 = scmp.lt.s32.totalorder %s184_s18, %s184_s18 }
  0x2a   :  { %248 = vmatpush3.bf16.msra.mxu0 %v247_v5  ;;  %v256_v13 = vpack.c.bf16 %v58_v12, %v57_v11  ;;  %v259_v16 = vpack.c.bf16 %v60_v15, %v59_v14  ;;  %v61_v17 = vld [vmem:[#allocation7 + $0x50] sm:$0xff]  ;;  %v62_v18 = vld [vmem:[#allocation7 + $0x58] sm:$0xff]  ;;  %v63_v20 = vld [vmem:[#allocation7 + $0x60] sm:$0xff]  ;;  %v161_v30 = vmul.u32 128, %v155_v28  ;;  %p323_p2 = scmp.ne.s32.totalorder %s184_s18, %s322_s0  ;;  %p328_p4 = scmp.lt.s32.totalorder %s322_s0, %s322_s0 }
  0x2b   :  { %249 = vmatprep.subr.bf16.mxu0 %v354_v0  ;;  %v262_v19 = vpack.c.bf16 %v62_v18, %v61_v17  ;;  %v64_v21 = vld [vmem:[#allocation7 + $0x68] sm:$0xff]  ;;  %v65_v23 = vld [vmem:[#allocation7 + $0x70] sm:$0xff]  ;;  %v66_v24 = vld [vmem:[#allocation7 + $0x78] sm:$0xff] }
  0x2c   :  { %v265_v22 = vpack.c.bf16 %v64_v21, %v63_v20  ;;  %v268_v25 = vpack.c.bf16 %v66_v24, %v65_v23  ;;  %v50_v26 = vld [vmem:[#allocation4] sm:$0xff]  ;;  %v164_v31 = vadd.s32 %v161_v30, %v157_v29  ;;  %p329_p5 = por %p328_p4, %p327_p3 }
  0x2d   :  { %v193_v40 = vld [vmem:[%s435_s3] ss:$0 sm:$0xff] }
  0x2e   :  { %251 = vmatpush3.bf16.msra.mxu0 %v250_v7  ;;  %v166_v33 = vadd.s32 %v165_v32, %v164_v31  ;;  %p330_p6 = pnand %p329_p5, %p323_p2 }
  0x2f   :  { %252 = vmatprep.subr.bf16.mxu0 %v354_v0 }
  0x30   :  { %v167_v34 = vmul.u32 2654435769, %v166_v33 }
  0x32   :  { %254 = vmatpush3.bf16.msra.mxu0 %v253_v10  ;;  %v168_v35 = vshrl.u32 %v167_v34, 16 }
  0x33   :  { %255 = vmatprep.subr.bf16.mxu0 %v354_v0 }
  0x34   :  { %v169_v36 = vxor.u32 %v168_v35, %v167_v34 }
  0x36   :  { %257 = vmatpush3.bf16.msra.mxu0 %v256_v13  ;;  %v170_v37 = vmul.u32 2146121005, %v169_v36 }
  0x37   :  { %258 = vmatprep.subr.bf16.mxu0 %v354_v0 }
  0x38   :  { %v171_v38 = vshrl.u32 %v170_v37, 15 }
  0x3a   :  { %260 = vmatpush3.bf16.msra.mxu0 %v259_v16  ;;  %v172_v43 = vxor.u32 %v171_v38, %v170_v37 }
  0x3b   :  { %261 = vmatprep.subr.bf16.mxu0 %v354_v0 }
  0x3c   :  { %vm173_vm2 = vcmp.ge.u32.totalorder %v172_v43, 1073741824 }
  0x3e   :  { %263 = vmatpush3.bf16.msra.mxu0 %v262_v19 }
  0x3f   :  { %264 = vmatprep.subr.bf16.mxu0 %v354_v0 }
  0x42   :  { %266 = vmatpush3.bf16.msra.mxu0 %v265_v22 }
  0x43   :  { %267 = vmatprep.subr.bf16.mxu0 %v354_v0 }
  0x46   :  { %269 = vmatpush3.bf16.msra.mxu0 %v268_v25 }
  0x49   :  { %244 = vmatmul.mubr.f32.vlgmr.msra.gmra.mrb[0].mxu0 %v50_v26 }
 0x11c   :  { %v133_v39 = vpop.f32.mrb[0].mxu0 }
 0x11d   :  { %v245_v41 = vpop.f32.mrb[1].mxu0  ;;  %v150_v42 = vadd.f32 %v193_v40, %v133_v39 }
 0x11f   :  { %vm151_vm1 = vcmp.gt.f32.partialorder %v150_v42, 0.0  ;;  %v152_v44 = vmul.f32 0.01, %v150_v42 }
 0x121   :  { %v153_v45 = vsel %vm151_vm1, %v150_v42, %v152_v44 }
 0x122   :  { %v174_v46 = vmul.f32 1.3333334, %v153_v45 }
 0x124   :  { %v175_v47 = vsel %vm173_vm2, %v174_v46, 0.0 }
 0x125   :  { %176 = vst [vmem:[#allocation9] sm:$0xff] %v175_v47 }
 0x126   :  { %333 = shalt.err (!%p330_p6)
}
 0x127   :  { %s334_s20 = scalar_lea.hbm %s436_s4, 128 }
 0x128   :  { %p335_p7 = scmp.ne.s32.totalorder %s436_s4, %s334_s20  ;;  %p338_p8 = scmp.lt.u32.totalorder %s334_s20, %s436_s4 }
 0x12a   :  { %p340_p9 = pnand %p338_p8, %p335_p7 }
 0x12c   :  { %343 = shalt.err (!%p340_p9)
}
 0x12d   :  { %186 = dma.vmem_to_hbm [thread:$0]  %s184_s18, 128, %s436_s4, [#allocation6]  }
 0x12e   :  { %348 = dma.done.wait [#allocation6], 128  }
 0x12f   :  { %349 = vsyncadd [#allocation6], 4294967168 }
 0x130   :  { %190 = vsyncpa [#allocation5], 1 }
 0x131   :  { %191 = vsyncpa [#allocation8], 1 }
 0x132   :  { %192 = vsyncpa [#allocation6], 1 }

</bundles_post_ra>
